<compile_context>
chip_gen: v7x
topology: tpu7x:2x2x1
jax: 0.10.0
libtpu: 0.0.40
codegen_flags: <defaults>
</compile_context>

<pallas_src>
import functools

import jax
import jax.numpy as jnp
from jax import lax
from jax.experimental import pallas as pl
from jax.experimental.pallas import tpu as pltpu


# --------------------------------------------------------------------------------------
# Kernel 1: adapter linear + cosine normalization (single pass over queries/contexts)
# --------------------------------------------------------------------------------------
def _prep_kernel(q_ref, c_ref, w_ref, b_ref, qn_ref, cn_ref, *, scale):
    # Adapter linear q2 = q @ W.T + b: contract last dims directly (no W.T copy),
    # MXU operands stay at input precision, accumulate in f32.
    q2 = lax.dot_general(q_ref[...], w_ref[...],
                         dimension_numbers=(((1,), (1,)), ((), ())),
                         preferred_element_type=jnp.float32)
    q2 = q2 + b_ref[...].astype(jnp.float32)

    # cos_sim normalization; torch clamps the norm at 1e-12 -> clamp squared norm at
    # 1e-24.  Fold `scale` into the same per-row multiply.  Element-wise math in f32
    # (v5e has no bf16 VPU/EUP); cast once to the MXU dtype on the way out.
    inv_q = lax.rsqrt(jnp.maximum(jnp.sum(q2 * q2, axis=-1, keepdims=True), 1e-24))
    qn_ref[...] = (q2 * (inv_q * jnp.float32(scale))).astype(qn_ref.dtype)

    c = c_ref[...].astype(jnp.float32)
    inv_c = lax.rsqrt(jnp.maximum(jnp.sum(c * c, axis=-1, keepdims=True), 1e-24))
    cn_ref[...] = (c * inv_c).astype(cn_ref.dtype)


# --------------------------------------------------------------------------------------
# Kernel 2: flash-style online-logsumexp ranking loss over pre-normalized embeddings
# --------------------------------------------------------------------------------------
def _loss_kernel(qn_ref, cn_ref, loss_ref, m_ref, l_ref, diag_ref, *,
                 tile, context_resident):
    i = pl.program_id(0)          # query row tile ("parallel")
    j = pl.program_id(1)          # context column tile (reduction axis, "arbitrary")
    nj = pl.num_programs(1)

    @pl.when(j == 0)
    def _init():
        m_ref[...] = jnp.full_like(m_ref, -jnp.inf)
        l_ref[...] = jnp.zeros_like(l_ref)

    qn = qn_ref[...]                                        # (T, D), MXU dtype
    if context_resident:
        # Full normalized context matrix is resident in VMEM (DMA'd from HBM once);
        # slice this step's column tile out of it.
        off = pl.multiple_of(j * tile, tile)
        cn = cn_ref[pl.ds(off, tile), :]                    # (T, D)
    else:
        cn = cn_ref[...]                                    # (T, D), streamed per step

    # Similarity tile qn @ cn.T via transposed-RHS contraction (no explicit transpose);
    # `scale` is already folded into qn.
    s = lax.dot_general(qn, cn,
                        dimension_numbers=(((1,), (1,)), ((), ())),
                        preferred_element_type=jnp.float32)  # (T, T) f32

    # Online logsumexp over column tiles.
    m_prev = m_ref[...]
    m_new = jnp.maximum(m_prev, jnp.max(s, axis=-1, keepdims=True))
    l_ref[...] = (jnp.exp(m_prev - m_new) * l_ref[...]
                  + jnp.sum(jnp.exp(s - m_new), axis=-1, keepdims=True))
    m_ref[...] = m_new

    # The label logit for global row r is scores[r, r]; it lives in the column block
    # j == i (row/column tiles have equal size).  Pull it straight out of the computed
    # s tile so it is bit-identical to the logit that entered the logsumexp.
    @pl.when(j == i)
    def _diag():
        rows = lax.broadcasted_iota(jnp.int32, s.shape, 0)
        cols = lax.broadcasted_iota(jnp.int32, s.shape, 1)
        diag_ref[...] = jnp.sum(jnp.where(rows == cols, s, 0.0),
                                axis=-1, keepdims=True)

    @pl.when(j == nj - 1)
    def _finalize():
        loss_ref[...] = m_ref[...] + jnp.log(l_ref[...]) - diag_ref[...]


# --------------------------------------------------------------------------------------
# Wrapper
# --------------------------------------------------------------------------------------
def _vmem_capacity_bytes():
    try:
        return int(pltpu.get_tpu_info().vmem_capacity_bytes)
    except Exception:
        return 64 << 20  # v7x per-TC capacity: the most conservative assumption


def _pick_tile(B, row_bytes, budget):
    """Largest lane/sublane-friendly tile dividing B whose buffers fit `budget` bytes."""
    for t in (512, 256, 128, 64, 32, 16, 8):
        if B % t == 0 and t * row_bytes <= budget:
            return t
    # Full-dim block (allowed by the (8,128) rule when it equals the array dim).
    return B


def mnr_loss(query_embeds, context_embeds, weight, bias, scale=20.0,
             tile=None, context_resident=None):
    """query_embeds, context_embeds: (B, D); weight: (D, D) torch-Linear layout; bias: (D,)."""
    B, D = query_embeds.shape
    assert context_embeds.shape == (B, D)
    mm_dtype = query_embeds.dtype              # bf16 in -> bf16 MXU operands; f32 stays f32
    bpe_in = jnp.dtype(query_embeds.dtype).itemsize
    bpe_mm = jnp.dtype(mm_dtype).itemsize

    vmem_cap = _vmem_capacity_bytes()
    budget = int(vmem_cap * 0.55)              # headroom; counted per-TC on v7x

    # ---------------- Kernel 1: adapter + normalization (one pass) ----------------
    # TODO(synk): for very large D (resident double-buffered W > VMEM budget) the adapter
    # matmul would need its own K-tiled grid axis; not needed at typical embedding sizes.
    w_bytes = 2 * (D * D + D) * bpe_in                       # resident W + bias, 2-deep
    row_bytes_prep = 2 * D * (2 * bpe_in + 2 * bpe_mm)       # q,c in + qn,cn out, 2-deep
    Tp = tile if tile is not None else _pick_tile(B, row_bytes_prep,
                                                  max(budget - w_bytes, 4 << 20))
    assert B % Tp == 0, "batch must be divisible by the tile size"
    prep_vmem = Tp * row_bytes_prep + w_bytes

    qn, cn = pl.pallas_call(
        functools.partial(_prep_kernel, scale=float(scale)),
        out_shape=(jax.ShapeDtypeStruct((B, D), mm_dtype),
                   jax.ShapeDtypeStruct((B, D), mm_dtype)),
        grid_spec=pltpu.PrefetchScalarGridSpec(
            num_scalar_prefetch=0,
            grid=(B // Tp,),
            in_specs=[
                pl.BlockSpec((Tp, D), lambda i: (i, 0)),     # query row tile
                pl.BlockSpec((Tp, D), lambda i: (i, 0)),     # context row tile
                pl.BlockSpec((D, D), lambda i: (0, 0)),      # W, resident
                pl.BlockSpec((1, D), lambda i: (0, 0)),      # b, resident
            ],
            out_specs=[
                pl.BlockSpec((Tp, D), lambda i: (i, 0)),     # qn (normalized, scaled)
                pl.BlockSpec((Tp, D), lambda i: (i, 0)),     # cn (normalized)
            ],
        ),
        compiler_params=pltpu.CompilerParams(
            dimension_semantics=("parallel",),
            vmem_limit_bytes=int(min(128 << 20, max(32 << 20, 2 * prep_vmem)))),
        cost_estimate=pl.CostEstimate(
            flops=int(2 * B * D * D + 8 * B * D),
            transcendentals=int(2 * B),
            bytes_accessed=int((2 * B * D + D * D + D) * bpe_in + 2 * B * D * bpe_mm)),
    )(query_embeds, context_embeds, weight, bias.reshape(1, D))

    # ---------------- Kernel 2: online-logsumexp ranking loss ----------------
    T = tile if tile is not None else _pick_tile(B, 2 * D * bpe_mm, budget // 4)
    assert B % T == 0, "batch must be divisible by the tile size"
    n = B // T

    if context_resident is None:
        # Resident context removes the (B/T)x HBM re-read but costs B*D*bpe of VMEM
        # (held once per TensorCore on v7x) -> only do it when it comfortably fits.
        context_resident = 2 * B * D * bpe_mm <= min(24 << 20, budget // 2)

    if context_resident:
        cn_spec = pl.BlockSpec((B, D), lambda i, j: (0, 0))  # fetched once, resident
        cn_vmem = 2 * B * D * bpe_mm
        cn_hbm = B * D * bpe_mm
    else:
        cn_spec = pl.BlockSpec((T, D), lambda i, j: (j, 0))  # streamed, re-read per row tile
        cn_vmem = 2 * T * D * bpe_mm
        cn_hbm = n * B * D * bpe_mm

    loss_vmem = 2 * T * D * bpe_mm + cn_vmem + 2 * T * 4 + 3 * T * 4

    per_row = pl.pallas_call(
        functools.partial(_loss_kernel, tile=T, context_resident=context_resident),
        out_shape=jax.ShapeDtypeStruct((B, 1), jnp.float32),
        grid_spec=pltpu.PrefetchScalarGridSpec(
            num_scalar_prefetch=0,
            grid=(n, n),
            in_specs=[
                pl.BlockSpec((T, D), lambda i, j: (i, 0)),   # qn row tile (fetched once per i)
                cn_spec,                                     # normalized contexts
            ],
            out_specs=pl.BlockSpec((T, 1), lambda i, j: (i, 0)),
            scratch_shapes=[
                pltpu.VMEM((T, 1), jnp.float32),   # running max m
                pltpu.VMEM((T, 1), jnp.float32),   # running sum l
                pltpu.VMEM((T, 1), jnp.float32),   # diagonal (label) logits
            ],
        ),
        compiler_params=pltpu.CompilerParams(
            dimension_semantics=("parallel", "arbitrary"),
            vmem_limit_bytes=int(min(128 << 20, max(32 << 20, 2 * loss_vmem)))),
        cost_estimate=pl.CostEstimate(
            flops=int(2 * B * B * D),
            transcendentals=int(B * B + B),
            bytes_accessed=int(B * D * bpe_mm + cn_hbm + 4 * B)),
    )(qn, cn)

    return jnp.sum(per_row) / jnp.float32(B)


# --------------------------------------------------------------------------------------
# Pure-JAX reference
# --------------------------------------------------------------------------------------
def mnr_loss_ref(query_embeds, context_embeds, weight, bias, scale=20.0, mm_dtype=None):
    q2 = (query_embeds.astype(jnp.float32) @ weight.astype(jnp.float32).T
          + bias.astype(jnp.float32))
    qn = q2 / jnp.maximum(jnp.linalg.norm(q2, axis=-1, keepdims=True), 1e-12)
    c = context_embeds.astype(jnp.float32)
    cn = c / jnp.maximum(jnp.linalg.norm(c, axis=-1, keepdims=True), 1e-12)
    if mm_dtype is not None:
        # Mirror the kernel's reduced-precision MXU operands (f32 accumulation).
        scores = lax.dot_general((qn * scale).astype(mm_dtype), cn.astype(mm_dtype),
                                 dimension_numbers=(((1,), (1,)), ((), ())),
                                 preferred_element_type=jnp.float32)
    else:
        scores = qn @ cn.T * scale
    labels = jnp.arange(scores.shape[0])
    logp = jax.nn.log_softmax(scores, axis=-1)
    return -jnp.mean(logp[labels, labels])


if __name__ == "__main__":
    key = jax.random.PRNGKey(0)
    kq, kc, kw, kb = jax.random.split(key, 4)

    # float32 case: B=16, D=128, tile=8 -> 2x2 grid exercises the online-LSE tiling.
    B, D = 16, 128
    q = jax.random.normal(kq, (B, D), dtype=jnp.float32)
    c = jax.random.normal(kc, (B, D), dtype=jnp.float32)
    bound = 1.0 / (D ** 0.5)
    w = jax.random.uniform(kw, (D, D), minval=-bound, maxval=bound, dtype=jnp.float32)
    b = jax.random.uniform(kb, (D,), minval=-bound, maxval=bound, dtype=jnp.float32)

    ref = mnr_loss_ref(q, c, w, b, scale=20.0)

    # Resident-context path (context DMA'd into VMEM once).
    loss_res = jax.block_until_ready(
        mnr_loss(q, c, w, b, scale=20.0, tile=8, context_resident=True))
    assert jnp.allclose(loss_res, ref, atol=1e-4, rtol=1e-4), (loss_res, ref)

    # Streamed-context fallback (for when B*D does not fit the VMEM budget).
    loss_str = jax.block_until_ready(
        mnr_loss(q, c, w, b, scale=20.0, tile=8, context_resident=False))
    assert jnp.allclose(loss_str, ref, atol=1e-4, rtol=1e-4), (loss_str, ref)

    # bfloat16 case (bf16 MXU operands, f32 accumulation): B=32, tile=16 -> 2x2 grid.
    B2 = 32
    kq2, kc2 = jax.random.split(jax.random.PRNGKey(1), 2)
    q2 = jax.random.normal(kq2, (B2, D), dtype=jnp.float32).astype(jnp.bfloat16)
    c2 = jax.random.normal(kc2, (B2, D), dtype=jnp.float32).astype(jnp.bfloat16)
    w2, b2 = w.astype(jnp.bfloat16), b.astype(jnp.bfloat16)
    ref_bf16 = mnr_loss_ref(q2, c2, w2, b2, scale=20.0, mm_dtype=jnp.bfloat16)
    loss_bf16 = jax.block_until_ready(mnr_loss(q2, c2, w2, b2, scale=20.0, tile=16))
    assert jnp.allclose(loss_bf16, ref_bf16, atol=2e-2, rtol=2e-2), (loss_bf16, ref_bf16)

    print("KERNEL_OK")
</pallas_src>

<mosaic_0001>
module attributes {stable_mosaic.version = 11 : i64} {
  func.func @_prep_kernel(%arg0: i32, %arg1: memref<8x128xf32, #tpu.memory_space<vmem>>, %arg2: memref<8x128xf32, #tpu.memory_space<vmem>>, %arg3: memref<128x128xf32, #tpu.memory_space<vmem>>, %arg4: memref<1x128xf32, #tpu.memory_space<vmem>>, %arg5: memref<8x128xf32, #tpu.memory_space<vmem>>, %arg6: memref<8x128xf32, #tpu.memory_space<vmem>>) attributes {dimension_semantics = [#tpu.dimension_semantics<parallel>], iteration_bounds = array<i64: 2>, scalar_prefetch = 0 : i64, scratch_operands = 0 : i64, tpu.core_type = #tpu.core_type<tc>, window_params = [{transform_indices = @transform_0, window_bounds = array<i64: 8, 128>}, {transform_indices = @transform_1, window_bounds = array<i64: 8, 128>}, {pipeline_mode = #tpu.pipeline_mode<synchronous>, transform_indices = @transform_2, window_bounds = array<i64: 128, 128>}, {pipeline_mode = #tpu.pipeline_mode<synchronous>, transform_indices = @transform_3, window_bounds = array<i64: 1, 128>}, {transform_indices = @transform_4, window_bounds = array<i64: 8, 128>}, {transform_indices = @transform_5, window_bounds = array<i64: 8, 128>}]} {
    %c0 = arith.constant 0 : index
    %c0_0 = arith.constant 0 : index
    %0 = vector.load %arg1[%c0, %c0_0] : memref<8x128xf32, #tpu.memory_space<vmem>>, vector<8x128xf32>
    %c0_1 = arith.constant 0 : index
    %c0_2 = arith.constant 0 : index
    %1 = vector.load %arg3[%c0_1, %c0_2] : memref<128x128xf32, #tpu.memory_space<vmem>>, vector<128x128xf32>
    %cst = arith.constant dense<0.000000e+00> : vector<8x128xf32>
    %2 = tpu.matmul %0, %1, %cst {dimension_numbers = #tpu.dot_dimension_numbers<[1], [1], [0], [0], [0, 0, 1, 0], [], []>} : vector<8x128xf32>, vector<128x128xf32>, vector<8x128xf32> -> vector<8x128xf32>
    %c0_3 = arith.constant 0 : index
    %c0_4 = arith.constant 0 : index
    %3 = vector.load %arg4[%c0_3, %c0_4] : memref<1x128xf32, #tpu.memory_space<vmem>>, vector<1x128xf32>
    %4 = vector.broadcast %3 : vector<1x128xf32> to vector<8x128xf32>
    %5 = arith.addf %2, %4 : vector<8x128xf32>
    %6 = arith.mulf %5, %5 : vector<8x128xf32>
    %cst_5 = arith.constant dense<0.000000e+00> : vector<8xf32>
    %7 = vector.multi_reduction <add>, %6, %cst_5 [1] : vector<8x128xf32> to vector<8xf32>
    %8 = vector.shape_cast %7 : vector<8xf32> to vector<8x1xf32>
    %cst_6 = arith.constant 1.000000e-24 : f32
    %9 = vector.broadcast %cst_6 : f32 to vector<8x1xf32>
    %10 = arith.maximumf %8, %9 : vector<8x1xf32>
    %11 = math.rsqrt %10 : vector<8x1xf32>
    %cst_7 = arith.constant 2.000000e+01 : f32
    %12 = vector.broadcast %cst_7 : f32 to vector<8x1xf32>
    %13 = arith.mulf %11, %12 : vector<8x1xf32>
    %14 = vector.broadcast %13 : vector<8x1xf32> to vector<8x128xf32>
    %15 = arith.mulf %5, %14 : vector<8x128xf32>
    %c0_8 = arith.constant 0 : index
    %c0_9 = arith.constant 0 : index
    %16 = vector.load %arg5[%c0_8, %c0_9] : memref<8x128xf32, #tpu.memory_space<vmem>>, vector<8x128xf32>
    tpu.vector_store %arg5[%c0_8, %c0_9], %15 {strides = array<i32>} : memref<8x128xf32, #tpu.memory_space<vmem>>, vector<8x128xf32>,
    %c0_10 = arith.constant 0 : index
    %c0_11 = arith.constant 0 : index
    %17 = vector.load %arg2[%c0_10, %c0_11] : memref<8x128xf32, #tpu.memory_space<vmem>>, vector<8x128xf32>
    %18 = arith.mulf %17, %17 : vector<8x128xf32>
    %cst_12 = arith.constant dense<0.000000e+00> : vector<8xf32>
    %19 = vector.multi_reduction <add>, %18, %cst_12 [1] : vector<8x128xf32> to vector<8xf32>
    %20 = vector.shape_cast %19 : vector<8xf32> to vector<8x1xf32>
    %cst_13 = arith.constant 1.000000e-24 : f32
    %21 = vector.broadcast %cst_13 : f32 to vector<8x1xf32>
    %22 = arith.maximumf %20, %21 : vector<8x1xf32>
    %23 = math.rsqrt %22 : vector<8x1xf32>
    %24 = vector.broadcast %23 : vector<8x1xf32> to vector<8x128xf32>
    %25 = arith.mulf %17, %24 : vector<8x128xf32>
    %c0_14 = arith.constant 0 : index
    %c0_15 = arith.constant 0 : index
    %26 = vector.load %arg6[%c0_14, %c0_15] : memref<8x128xf32, #tpu.memory_space<vmem>>, vector<8x128xf32>
    tpu.vector_store %arg6[%c0_14, %c0_15], %25 {strides = array<i32>} : memref<8x128xf32, #tpu.memory_space<vmem>>, vector<8x128xf32>,
    return
  }
  func.func @transform_0(%arg0: i32) -> (i32, i32) {
    %c0_i32 = arith.constant 0 : i32
    %c0_i32_0 = arith.constant 0 : i32
    return %arg0, %c0_i32 : i32, i32
  }
  func.func @transform_1(%arg0: i32) -> (i32, i32) {
    %c0_i32 = arith.constant 0 : i32
    %c0_i32_0 = arith.constant 0 : i32
    return %arg0, %c0_i32 : i32, i32
  }
  func.func @transform_2(%arg0: i32) -> (i32, i32) {
    %c0_i32 = arith.constant 0 : i32
    %c0_i32_0 = arith.constant 0 : i32
    %c0_i32_1 = arith.constant 0 : i32
    return %c0_i32, %c0_i32_0 : i32, i32
  }
  func.func @transform_3(%arg0: i32) -> (i32, i32) {
    %c0_i32 = arith.constant 0 : i32
    %c0_i32_0 = arith.constant 0 : i32
    %c0_i32_1 = arith.constant 0 : i32
    return %c0_i32, %c0_i32_0 : i32, i32
  }
  func.func @transform_4(%arg0: i32) -> (i32, i32) {
    %c0_i32 = arith.constant 0 : i32
    %c0_i32_0 = arith.constant 0 : i32
    return %arg0, %c0_i32 : i32, i32
  }
  func.func @transform_5(%arg0: i32) -> (i32, i32) {
    %c0_i32 = arith.constant 0 : i32
    %c0_i32_0 = arith.constant 0 : i32
    return %arg0, %c0_i32 : i32, i32
  }
}

</mosaic_0001>

<bundles_post_ra>
// kernel: tpu_custom_call.1
= control target key start
LH: loop header
LB: loop body
LE: loop exit
PB: predicated region body
PF: predicated region fallthrough
CT: control target
= control target key end

     0   :  { %s1263_s0 = inlined_call_operand.hbm [shape: f32[16,128], index: 0, kind: input, shape index: {}]   ;;  %s1264_s1 = inlined_call_operand.hbm [shape: f32[16,128], index: 1, kind: input, shape index: {}]   ;;  %s1265_s2 = inlined_call_operand.hbm [shape: f32[128,128], index: 2, kind: input, shape index: {}]   ;;  %s1266_s3 = inlined_call_operand.vmem [shape: f32[1,128], index: 3, kind: input, shape index: {}]   ;;  %s1267_s4 = inlined_call_operand.hbm [shape: f32[16,128], index: 4, kind: output, shape index: {0}]   ;;  %s1268_s5 = inlined_call_operand.hbm [shape: f32[16,128], index: 5, kind: output, shape index: {1}]  }
   0x1   :  { %1273 = sst [smem:[#allocation17_spill]] %s1265_s2 }
   0x2   :  { %11 = vsyncpa [#allocation3], 0 }
   0x3   :  { %13 = vsyncpa [#allocation3 + $0x1], 0 }
   0x4   :  { %14 = vsyncpa [#allocation6], 0 }
   0x5   :  { %16 = vsyncpa [#allocation6 + $0x1], 0 }
   0x6   :  { %17 = vsyncpa [#allocation4], 0 }
   0x7   :  { %19 = vsyncpa [#allocation4 + $0x1], 0 }
   0x8   :  { %20 = vsyncpa [#allocation10], 0 }
   0x9   :  { %22 = vsyncpa [#allocation10 + $0x1], 0  ;;  %s987_s18 = smov 0   ;;  %s989_s19 = smov 0  }
   0xa   :  { %s991_s20 = smov 0   ;;  %s993_s21 = smov 0  }
   0xb LB: > { %s1008_s22 = sadd.s32 4294967295, %s945_s21   ;;  %s578_s23 = sadd.s32 4294967294, %s945_s21   ;;  %s945_s21 = sphi %s993_s21, %s1294_s21   ;;  %s941_s20 = sphi %s991_s20, %s1293_s20   ;;  %s937_s19 = sphi %s989_s19, %s1292_s19   ;;  %s933_s18 = sphi %s987_s18, %s1291_s18  }
   0xc   : > { %p48_p0 = scmp.ne.s32.totalorder %s937_s19, %s933_s18  ;;  %p1269_p1 = scmp.eq.s32.totalorder %s1008_s22, 0 }
   0xd   : > { %p146_p3 = scmp.eq.s32.totalorder %s578_s23, 1  ;;  %p579_p5 = scmp.ge.s32.totalorder %s945_s21, 1 }
   0xe   : > { %p1017_p4 = por %p1269_p1, %p48_p0  ;;  %p179_p7 = scmp.lt.s32.totalorder %s945_s21, 3 }
   0xf   : > { %p1022_p6 = por %p146_p3, %p48_p0  ;;  %s947_s27 = smov [#allocation7]  }
  0x10   : > { %s1274_s24 = scalar_select %p1017_p4, 1, 0 }
  0x11   : > { %s1275_s25 = scalar_select %p1022_p6, 1, 0 }
  0x12   : > { %p1027_p8 = pnand %p579_p5, %p179_p7  ;;  %s191_s28 = sshll.u32 %s947_s27, 4  ;;  %s1031_s28 = int_to_ptr.vmem [resolvable:$true] %s191_s28 }
  0x13   : > { %s1043_s30 = sadd.s32 1, %s945_s21   ;;  %s35_s6 = sadd.s32 1, %s941_s20 }
  0x14   : > { %s1276_s26 = scalar_select %p1027_p8, 1, 0 }
  0x15   : > { %p687_p9 = pneg %p1027_p8  ;;  %s32_s7 = ssub.s32 %s945_s21, %s1043_s30 }
  0x16   : > { %s1278_s2 = sld [smem:[#allocation17_spill]] }
  0x17   : > { %p1038_p11 = pnand %p687_p9, %p1269_p1 }
  0x19   : > { %p753_p13 = pneg %p1038_p11 }
  0x1c   : > { %s751_s10 = scalar_lea.hbm %s1278_s2, 2048 }
  0x1d   : > { %p752_p12 = scmp.ne.s32.totalorder %s1278_s2, %s751_s10  ;;  %p758_p5 = scmp.lt.u32.totalorder %s751_s10, %s1278_s2 }
  0x1f   : > { %p754_p0 = pnand %p753_p13, %p752_p12 }
  0x21   : > { %p755_p3 = pneg %p754_p0 }
  0x23   : > { %p760_p7 = pnand %p758_p5, %p755_p3 }
  0x25   : > { %763 = shalt.err (!%p760_p7)
}
  0x26   : > { %s764_s15 = scalar_lea.vmem %s1031_s28, 2048  ;;  %p772_p2 = scmp.lt.s32.totalorder %s1031_s28, %s1031_s28 }
  0x27   : > { %p765_p9 = scmp.ne.s32.totalorder %s1031_s28, %s764_s15  ;;  %p773_p6 = scmp.lt.s32.totalorder %s764_s15, %s764_s15 }
  0x29   : > { %p767_p10 = pnand %p765_p9, %p753_p13  ;;  %p774_p4 = por %p773_p6, %p772_p2 }
  0x2b   : > { %p768_p1 = pneg %p767_p10 }
  0x2d   : > { %p775_p8 = pnand %p774_p4, %p768_p1 }
  0x2f   : > { %778 = shalt.err (!%p775_p8)
}
  0x30   : > { %s948_s16 = smov 128   ;;  %s949_s17 = smov 8  }
  0x31   : > { %690 = dma.hbm_to_vmem [thread:$0]  (!%p1038_p11), %s1278_s2, 2048, %s1031_s28, [#allocation6], %s948_s16, %s948_s16, %s949_s17  }
  0x32   : > { %p33_p2 = scmp.eq.s32.totalorder %s32_s7, 0  ;;  %p42_p1 = scmp.ne.s32.totalorder %s941_s20, %s937_s19 }
  0x33   : > { %p43_p4 = scmp.eq.s32.totalorder %s945_s21, 0  ;;  %p706_p6 = scmp.lt.s32.totalorder %s945_s21, 2 }
  0x34   : > { %s1074_s8 = scalar_select %p33_p2, %s941_s20, %s35_s6  }
  0x35   : > { %p44_p8 = por %p43_p4, %p42_p1  ;;  %p1280_p10 = scmp.eq.s32.totalorder %s1008_s22, 1 }
  0x36   : > { %1279 = sst [smem:[#allocation16_spill]] %s1074_s8  ;;  %s208_s10 = sand.u32 1, %s941_s20  }
  0x37   : > { %p1078_p12 = por %p1280_p10, %p42_p1  ;;  %s583_s11 = sshll.u32 %s945_s21, 7 }
  0x38   : > { %s1084_s12 = sshll.u32 %s208_s10, 3  ;;  %s1089_s28 = scalar_lea.hbm %s1263_s0, %s583_s11 }
  0x39   : > { %s1281_s9 = scalar_select %p1078_p12, 1, 0 }
  0x3a   : > { %s212_s6 = scalar_lea.vmem [#allocation2], %s1084_s12  ;;  %p1092_p11 = pnand %p706_p6, %p44_p8 }
  0x3b   : > { %s219_s7 = sshll.u32 %s212_s6, 4  ;;  %s1101_s17 = scalar_lea.hbm %s1264_s1, %s583_s11  ;;  %s1096_s7 = int_to_ptr.vmem [resolvable:$true] %s219_s7 }
  0x3c   : > { %s209_s23 = scalar_lea.sflag [#allocation3], %s208_s10  ;;  %s779_s27 = scalar_lea.hbm %s1089_s28, 128 }
  0x3d   : > { %p780_p13 = scmp.ne.s32.totalorder %s1089_s28, %s779_s27  ;;  %p781_p0 = pneg %p1092_p11 }
  0x3e   : > { %s784_s6 = scalar_lea.hbm %s1263_s0, 256  ;;  %p785_p7 = scmp.lt.u32.totalorder %s1089_s28, %s1263_s0 }
  0x3f   : > { %p782_p3 = pnand %p781_p0, %p780_p13  ;;  %p786_p9 = scmp.lt.u32.totalorder %s784_s6, %s779_s27 }
  0x40   : > { %p788_p1 = scmp.lt.u32.totalorder %s779_s27, %s1089_s28 }
  0x41   : > { %p783_p5 = pneg %p782_p3  ;;  %p787_p2 = por %p786_p9, %p785_p7 }
  0x43   : > { %p789_p4 = por %p788_p1, %p787_p2 }
  0x45   : > { %p790_p6 = pnand %p789_p4, %p783_p5 }
  0x47   : > { %793 = shalt.err (!%p790_p6)
}
  0x48   : > { %s794_s10 = scalar_lea.vmem %s1096_s7, 128  ;;  %s950_s11 = smov [#allocation2]  }
  0x49   : > { %p795_p8 = scmp.ne.s32.totalorder %s1096_s7, %s794_s10  ;;  %s799_s15 = sshll.u32 %s950_s11, 4  ;;  %s800_s15 = int_to_ptr.vmem [resolvable:$false] %s799_s15 }
  0x4a   : > { %s801_s2 = scalar_lea.vmem %s800_s15, 256  ;;  %p802_p3 = scmp.lt.s32.totalorder %s1096_s7, %s800_s15 }
  0x4b   : > { %p797_p10 = pnand %p795_p8, %p781_p0  ;;  %p803_p7 = scmp.lt.s32.totalorder %s801_s2, %s794_s10 }
  0x4d   : > { %p798_p13 = pneg %p797_p10  ;;  %p804_p9 = por %p803_p7, %p802_p3 }
  0x4f   : > { %p805_p2 = pnand %p804_p9, %p798_p13 }
  0x51   : > { %808 = shalt.err (!%p805_p2)
}
  0x52   : > { %694 = dma.hbm_to_vmem [thread:$0]  (!%p1092_p11), %s1089_s28, 128, %s1096_s7, %s209_s23  }
  0x53   : > { %s226_s8 = sand.u32 1, %s945_s21   ;;  %s230_s16 = scalar_lea.vmem [#allocation5], %s1084_s12 }
  0x54   : > { %s237_s27 = sshll.u32 %s230_s16, 4  ;;  %s227_s29 = scalar_lea.sflag [#allocation6], %s226_s8  ;;  %s238_s27 = int_to_ptr.vmem [resolvable:$true] %s237_s27 }
  0x55   : > { %s809_s13 = scalar_lea.hbm %s1101_s17, 128  ;;  %s814_s11 = scalar_lea.hbm %s1264_s1, 256 }
  0x56   : > { %p810_p5 = scmp.ne.s32.totalorder %s1101_s17, %s809_s13  ;;  %p815_p6 = scmp.lt.u32.totalorder %s1101_s17, %s1264_s1 }
  0x57   : > { %p816_p8 = scmp.lt.u32.totalorder %s814_s11, %s809_s13  ;;  %p818_p13 = scmp.lt.u32.totalorder %s809_s13, %s1101_s17 }
  0x58   : > { %p812_p1 = pnand %p810_p5, %p781_p0 }
  0x59   : > { %p817_p10 = por %p816_p8, %p815_p6 }
  0x5a   : > { %p813_p4 = pneg %p812_p1 }
  0x5b   : > { %p819_p3 = por %p818_p13, %p817_p10 }
  0x5d   : > { %p820_p7 = pnand %p819_p3, %p813_p4 }
  0x5f   : > { %823 = shalt.err (!%p820_p7)
}
  0x60   : > { %s824_s12 = scalar_lea.vmem %s238_s27, 128  ;;  %s951_s28 = smov [#allocation5]  }
  0x61   : > { %p825_p9 = scmp.ne.s32.totalorder %s238_s27, %s824_s12  ;;  %s829_s7 = sshll.u32 %s951_s28, 4  ;;  %s830_s7 = int_to_ptr.vmem [resolvable:$false] %s829_s7 }
  0x62   : > { %s831_s23 = scalar_lea.vmem %s830_s7, 256  ;;  %p832_p1 = scmp.lt.s32.totalorder %s238_s27, %s830_s7 }
  0x63   : > { %p827_p2 = pnand %p825_p9, %p781_p0  ;;  %p833_p12 = scmp.lt.s32.totalorder %s831_s23, %s824_s12 }
  0x65   : > { %p828_p5 = pneg %p827_p2  ;;  %p834_p6 = por %p833_p12, %p832_p1 }
  0x67   : > { %p835_p8 = pnand %p834_p6, %p828_p5 }
  0x69   : > { %838 = shalt.err (!%p835_p8)
}
  0x6a   : > { %697 = dma.hbm_to_vmem [thread:$0]  (!%p1092_p11), %s1101_s17, 128, %s238_s27, %s227_s29  }
  0x6b   : > { %p1283_p4 = scmp.ne.s32.totalorder %s1276_s26, 0 }
  0x6c   : > { %s1152_s8 = sand.u32 (!%p1283_p4), 1, %s937_s19   ;;  %p1284_p12 = scmp.ne.s32.totalorder (!%p1283_p4), %s1274_s24, 0 }
  0x6d   : > { %246 = sbr.rel (%p1283_p4) target bundleno = 601 (0x259), region = 36  ;;  %s1155_s16 = sshll.u32 (!%p1283_p4), %s1152_s8, 3 }
  0x6e   : > { %s249_s13 = scalar_lea.sflag (!%p1283_p4), [#allocation3], %s1152_s8  ;;  %s252_s6 = scalar_lea.vmem (!%p1283_p4), [#allocation2], %s1155_s16 }
  0x74   : > { %912 = dma.done.wait (%p1284_p12), %s249_s13, 128  }
  0x75   : > { %914 = vsyncadd (%p1284_p12), %s249_s13, 4294967168  ;;  %s257_s26 = sand.u32 1, %s1008_s22   ;;  %s261_s17 = scalar_lea.vmem [#allocation5], %s1155_s16 }
  0x76   : > { %s258_s14 = scalar_lea.sflag [#allocation6], %s257_s26 }
  0x77   : > { %916 = dma.done.wait (%p1284_p12), %s258_s14, 128  }
  0x78   : > { %918 = vsyncadd (%p1284_p12), %s258_s14, 4294967168  ;;  %p1285_p11 = scmp.eq.s32.totalorder %s1008_s22, 0 }
  0x7a   : > { %920 = dma.done.wait (%p1285_p11), [#allocation6], 2048   ;;  %p1286_p0 = pmov %p1285_p11 }
  0x7b   : > { %v952_v0 = vmov 0.0|0.0   ;;  %vm953_vm0 = vmmov 0   ;;  %v954_v1 = vmov 0.0   ;;  %v303_v2 = vld [vmem:[#allocation7] sm:$0xff]  ;;  %v304_v3 = vld [vmem:[#allocation7 + $0x8] sm:$0xff]  ;;  %v305_v5 = vld [vmem:[#allocation7 + $0x10] sm:$0xff] }
  0x7c   : > { %922 = vsyncadd (%p1286_p0), [#allocation6], 4294965248  ;;  %651 = vmatprep.subr.bf16.mxu0 %v952_v0  ;;  %648 = vmatprep.mubr.msk.f32.mxu0 %vm953_vm0, %v954_v1  ;;  %v652_v4 = vpack.c.bf16 %v304_v3, %v303_v2  ;;  %v306_v6 = vld [vmem:[#allocation7 + $0x18] sm:$0xff]  ;;  %v307_v8 = vld [vmem:[#allocation7 + $0x20] sm:$0xff]  ;;  %s595_s29 = sshll.u32 %s1008_s22, 7  ;;  %s294_s10 = scalar_lea.vmem [#allocation8], %s1155_s16 }
  0x7d   : > { %v655_v7 = vpack.c.bf16 %v306_v6, %v305_v5  ;;  %v308_v9 = vld [vmem:[#allocation7 + $0x28] sm:$0xff]  ;;  %v309_v11 = vld [vmem:[#allocation7 + $0x30] sm:$0xff]  ;;  %v310_v12 = vld [vmem:[#allocation7 + $0x38] sm:$0xff]  ;;  %s431_s11 = sshll.u32 %s294_s10, 4  ;;  %s301_s15 = scalar_lea.vmem [#allocation9], %s1155_s16  ;;  %s1190_s11 = int_to_ptr.vmem [resolvable:$true] %s431_s11 }
  0x7e   : > { %653 = vmatpush3.bf16.xpose.msra.mxu0 %v652_v4  ;;  %v658_v10 = vpack.c.bf16 %v308_v9, %v307_v8  ;;  %v661_v13 = vpack.c.bf16 %v310_v12, %v309_v11  ;;  %v311_v14 = vld [vmem:[#allocation7 + $0x40] sm:$0xff]  ;;  %v312_v15 = vld [vmem:[#allocation7 + $0x48] sm:$0xff]  ;;  %v313_v17 = vld [vmem:[#allocation7 + $0x50] sm:$0xff]  ;;  %s444_s2 = sshll.u32 %s301_s15, 4  ;;  %s1188_s7 = scalar_lea.hbm %s1267_s4, %s595_s29  ;;  %s1197_s2 = int_to_ptr.vmem [resolvable:$true] %s444_s2 }
  0x7f   : > { %654 = vmatprep.subr.bf16.mxu0 %v952_v0  ;;  %v664_v16 = vpack.c.bf16 %v312_v15, %v311_v14  ;;  %v314_v18 = vld [vmem:[#allocation7 + $0x58] sm:$0xff]  ;;  %v315_v20 = vld [vmem:[#allocation7 + $0x60] sm:$0xff]  ;;  %v316_v21 = vld [vmem:[#allocation7 + $0x68] sm:$0xff]  ;;  %s1195_s13 = scalar_lea.hbm %s1268_s5, %s595_s29  ;;  %s839_s26 = scalar_lea.vmem %s1190_s11, 128 }
  0x80   : > { %v667_v19 = vpack.c.bf16 %v314_v18, %v313_v17  ;;  %v670_v22 = vpack.c.bf16 %v316_v21, %v315_v20  ;;  %v317_v23 = vld [vmem:[#allocation7 + $0x70] sm:$0xff]  ;;  %v318_v24 = vld [vmem:[#allocation7 + $0x78] sm:$0xff]  ;;  %v302_v26 = vld [vmem:[%s252_s6] sm:$0xff]  ;;  %s413_s6 = scalar_lea.sflag [#allocation4], %s1152_s8  ;;  %p840_p10 = scmp.ne.s32.totalorder %s1190_s11, %s839_s26 }
  0x81   : > { %v673_v25 = vpack.c.bf16 %v318_v24, %v317_v23  ;;  %v592_v27 = vld [vmem:[%s1266_s3] ss:$0 sm:$0xff]  ;;  %v404_v31 = vld [vmem:[%s261_s17] sm:$0xff]  ;;  %p1287_p13 = scmp.ne.s32.totalorder %s1281_s9, 0  ;;  %s955_s14 = smov [#allocation8]  }
  0x82   : > { %v405_v33 = vmul.f32 %v404_v31, %v404_v31  ;;  %s843_s17 = sshll.u32 %s955_s14, 4  ;;  %s844_s17 = int_to_ptr.vmem [resolvable:$false] %s843_s17 }
  0x83   : > { %p841_p3 = pnand %p840_p10, %p1287_p13  ;;  %s845_s24 = scalar_lea.vmem %s844_s17, 256 }
  0x84   : > { %p846_p9 = scmp.lt.s32.totalorder %s1190_s11, %s844_s17  ;;  %p847_p2 = scmp.lt.s32.totalorder %s845_s24, %s839_s26 }
  0x85   : > { %p842_p7 = pneg %p841_p3 }
  0x86   : > { %656 = vmatpush3.bf16.xpose.msra.mxu0 %v655_v7  ;;  %p848_p5 = por %p847_p2, %p846_p9 }
  0x87   : > { %657 = vmatprep.subr.bf16.mxu0 %v952_v0 }
  0x88   : > { %p849_p1 = pnand %p848_p5, %p842_p7 }
  0x8e   : > { %659 = vmatpush3.bf16.xpose.msra.mxu0 %v658_v10 }
  0x8f   : > { %660 = vmatprep.subr.bf16.mxu0 %v952_v0 }
  0x96   : > { %662 = vmatpush3.bf16.xpose.msra.mxu0 %v661_v13 }
  0x97   : > { %663 = vmatprep.subr.bf16.mxu0 %v952_v0 }
  0x9e   : > { %665 = vmatpush3.bf16.xpose.msra.mxu0 %v664_v16 }
  0x9f   : > { %666 = vmatprep.subr.bf16.mxu0 %v952_v0 }
  0xa6   : > { %668 = vmatpush3.bf16.xpose.msra.mxu0 %v667_v19 }
  0xa7   : > { %669 = vmatprep.subr.bf16.mxu0 %v952_v0 }
  0xae   : > { %671 = vmatpush3.bf16.xpose.msra.mxu0 %v670_v22 }
  0xaf   : > { %672 = vmatprep.subr.bf16.mxu0 %v952_v0 }
  0xb6   : > { %674 = vmatpush3.bf16.xpose.msra.mxu0 %v673_v25 }
  0xbd   : > { %649 = vmatmul.mubr.f32.vlgmr.msra.gmra.mrb[0].mxu0 %v302_v26 }
 0x190   : > { %v392_v28 = vpop.f32.mrb[0].mxu0 }
 0x191   : > { %v393_v29 = vadd.f32 %v592_v27, %v392_v28  ;;  %v650_v30 = vpop.f32.mrb[1].mxu0 }
 0x193   : > { %v396_v32 = vmul.f32 %v393_v29, %v393_v29 }
 0x195   : > { %397 = vadd.xlane.f32.xlu0 %v396_v32 }
 0x199   : > { %406 = vadd.xlane.f32.xlu0 %v405_v33 }
 0x222   : > { %v398_v34 = vpop.xlane.xlu0 %397 }
 0x223   : > { %v399_v35 = vmax.f32 %v398_v34, 1e-24 }
 0x225   : > { %747 = vrsqrt.f32 %v399_v35 }
 0x226   : > { %v407_v36 = vpop.xlane.xlu0 %406 }
 0x227   : > { %v408_v37 = vmax.f32 %v407_v36, 1e-24 }
 0x229   : > { %749 = vrsqrt.f32 %v408_v37 }
 0x22f   : > { %v748_v38 = vpop.eup %747 }
 0x230   : > { %v401_v39 = vmul.f32 20.0, %v748_v38 }
 0x232   : > { %v402_v40 = vmul.f32 %v401_v39, %v393_v29 }
 0x233   : > { %v750_v41 = vpop.eup %749 }
 0x234   : > { %403 = vst [vmem:[%s294_s10] sm:$0xff] %v402_v40  ;;  %v410_v42 = vmul.f32 %v750_v41, %v404_v31 }
 0x235   : > { %852 = shalt.err (!%p849_p1)
}
 0x236   : > { %s853_s27 = scalar_lea.hbm %s1188_s7, 128  ;;  %s857_s12 = scalar_lea.hbm %s1267_s4, 256 }
 0x237   : > { %p854_p6 = scmp.ne.s32.totalorder %s1188_s7, %s853_s27  ;;  %p858_p12 = scmp.lt.u32.totalorder %s1188_s7, %s1267_s4 }
 0x238   : > { %p859_p11 = scmp.lt.u32.totalorder %s857_s12, %s853_s27  ;;  %p861_p10 = scmp.lt.u32.totalorder %s853_s27, %s1188_s7 }
 0x239   : > { %p855_p8 = pnand %p854_p6, %p1287_p13 }
 0x23a   : > { %p860_p0 = por %p859_p11, %p858_p12 }
 0x23b   : > { %p856_p4 = pneg %p855_p8 }
 0x23c   : > { %p862_p3 = por %p861_p10, %p860_p0 }
 0x23e   : > { %p863_p7 = pnand %p862_p3, %p856_p4 }
 0x240   : > { %866 = shalt.err (!%p863_p7)
}
 0x241   : > { %683 = dma.vmem_to_hbm [thread:$0]  (%p1287_p13), %s1190_s11, 128, %s1188_s7, %s413_s6   ;;  %411 = vst [vmem:[%s301_s15] sm:$0xff] %v410_v42 }
 0x242   : > { %s418_s23 = scalar_lea.sflag [#allocation10], %s1152_s8  ;;  %s867_s26 = scalar_lea.vmem %s1197_s2, 128 }
 0x243   : > { %p868_p9 = scmp.ne.s32.totalorder %s1197_s2, %s867_s26  ;;  %s956_s14 = smov [#allocation9]  }
 0x244   : > { %s871_s17 = sshll.u32 %s956_s14, 4  ;;  %s872_s17 = int_to_ptr.vmem [resolvable:$false] %s871_s17 }
 0x245   : > { %p869_p2 = pnand %p868_p9, %p1287_p13  ;;  %s873_s24 = scalar_lea.vmem %s872_s17, 256 }
 0x246   : > { %p874_p1 = scmp.lt.s32.totalorder %s1197_s2, %s872_s17  ;;  %p875_p6 = scmp.lt.s32.totalorder %s873_s24, %s867_s26 }
 0x247   : > { %p870_p5 = pneg %p869_p2 }
 0x248   : > { %p876_p8 = por %p875_p6, %p874_p1 }
 0x24a   : > { %p877_p4 = pnand %p876_p8, %p870_p5 }
 0x24c   : > { %880 = shalt.err (!%p877_p4)
}
 0x24d   : > { %s881_s8 = scalar_lea.hbm %s1195_s13, 128  ;;  %s885_s15 = scalar_lea.hbm %s1268_s5, 256 }
 0x24e   : > { %p882_p12 = scmp.ne.s32.totalorder %s1195_s13, %s881_s8  ;;  %p886_p10 = scmp.lt.u32.totalorder %s1195_s13, %s1268_s5 }
 0x24f   : > { %p887_p3 = scmp.lt.u32.totalorder %s885_s15, %s881_s8  ;;  %p889_p9 = scmp.lt.u32.totalorder %s881_s8, %s1195_s13 }
 0x250   : > { %p883_p11 = pnand %p882_p12, %p1287_p13 }
 0x251   : > { %p888_p7 = por %p887_p3, %p886_p10 }
 0x252   : > { %p884_p0 = pneg %p883_p11 }
 0x253   : > { %p890_p2 = por %p889_p9, %p888_p7 }
 0x255   : > { %p891_p5 = pnand %p890_p2, %p884_p0 }
 0x257   : > { %894 = shalt.err (!%p891_p5)
}
 0x258   : > { %684 = dma.vmem_to_hbm [thread:$0]  (%p1287_p13), %s1197_s2, 128, %s1195_s13, %s418_s23  }
 0x259 PF: > { %s456_s27 = sand.u32 1, %s933_s18   ;;  %p1288_p1 = scmp.ne.s32.totalorder %s1275_s25, 0 }
 0x25a   : > { %p1289_p6 = scmp.ge.s32.totalorder %s945_s21, 2  ;;  %s457_s29 = scalar_lea.sflag [#allocation4], %s456_s27 }
 0x25c   : > { %p699_p8 = pnand %p1289_p6, %p1288_p1 }
 0x25e   : > { %924 = dma.done.wait (!%p699_p8), %s457_s29, 128  }
 0x25f   : > { %926 = vsyncadd (!%p699_p8), %s457_s29, 4294967168  ;;  %s466_s10 = scalar_lea.sflag [#allocation10], %s456_s27 }
 0x260   : > { %928 = dma.done.wait (!%p699_p8), %s466_s10, 128  }
 0x261   : > { %930 = vsyncadd (!%p699_p8), %s466_s10, 4294967168  ;;  %s1290_s9 = sld [smem:[#allocation16_spill]]  ;;  %p25_p13 = scmp.ge.s32.totalorder %s1043_s30, 4  }
 0x262   : > { %s1291_s18 = smov %s937_s19  ;;  %s1292_s19 = smov %s941_s20 }
 0x263   : > { %s1294_s21 = smov %s1043_s30  ;;  %27 = sbr.rel (!%p25_p13) target bundleno = 11 (0xb), region = 115 }
 0x267   : > { %s1293_s20 = smov %s1290_s9 }
 0x26a   :  { %471 = vsyncpa [#allocation3], 1 }
 0x26b   :  { %473 = vsyncpa [#allocation3 + $0x1], 1 }
 0x26c   :  { %474 = vsyncpa [#allocation6], 1 }
 0x26d   :  { %476 = vsyncpa [#allocation6 + $0x1], 1 }
 0x26e   :  { %477 = vsyncpa [#allocation4], 1 }
 0x26f   :  { %479 = vsyncpa [#allocation4 + $0x1], 1 }
 0x270   :  { %480 = vsyncpa [#allocation10], 1 }
 0x271   :  { %482 = vsyncpa [#allocation10 + $0x1], 1 }

</bundles_post_ra>
